<compile_context>
chip_gen: v7x
topology: tpu7x:2x2x1
jax: 0.10.0
libtpu: 0.0.40
codegen_flags: <defaults>
</compile_context>

<pallas_src>
import jax
import jax.numpy as jnp
from jax.experimental import pallas as pl
from jax.experimental.pallas import tpu as pltpu

# ---------------- config (small, consistent with the module) ----------------
B = 2          # batch
S = 8          # sequence length
H = 32         # hidden_size
HEADS = 4      # heads
HEAD = H // HEADS
PF = 64        # pf_size
EPS = 1e-5
SCALE = float(HEAD) ** 0.5
BS = B * S     # flattened rows
LANE = 128     # lane-dense padding width for the FFN hidden dim


def _layernorm(x, gamma, beta):
    # x: (BS, D), gamma/beta: (1, D) -- torch.nn.LayerNorm over last dim, eps=1e-5
    mean = jnp.mean(x, axis=-1, keepdims=True)
    var = jnp.mean((x - mean) ** 2, axis=-1, keepdims=True)
    inv = jax.lax.rsqrt(var + EPS)
    return (x - mean) * inv * gamma + beta


def encoder_layer_kernel(x_ref, bias_ref, slab_ref, w2_ref, vec_ref, out_ref):
    # Single invocation: all B*S rows at once.
    x = x_ref[...]                                   # (BS, H) f32
    bias = bias_ref[...]                             # (BS, BS) additive mask bias
    slab = slab_ref[...]                             # (H, 3*LANE) = [A | C | w1pad]
    vecs = vec_ref[...]                              # (8, LANE) packed vectors

    bo = vecs[0:1, 0:H]                              # fc_out bias
    g1 = vecs[1:2, 0:H]                              # LN1 gamma
    be1 = vecs[2:3, 0:H]                             # LN1 beta
    b1 = vecs[3:4, :]                                # FFN1 bias (zero-padded to LANE)
    b2 = vecs[4:5, 0:H]                              # FFN2 bias
    g2 = vecs[5:6, 0:H]                              # LN2 gamma
    be2 = vecs[6:7, 0:H]                             # LN2 beta

    A = slab[:, 0:LANE]                              # (H, HEADS*H)  folded Q·K^T
    C = slab[:, LANE:2 * LANE]                       # (H, HEADS*H)  folded V·Wo
    w1 = slab[:, 2 * LANE:3 * LANE]                  # (H, LANE)     FFN1 (zero-padded)

    # ---- multi-head self attention (Q = K = V = x), folded-weight form ----
    xA = jnp.dot(x, A, preferred_element_type=jnp.float32)   # (BS, 128)
    xC = jnp.dot(x, C, preferred_element_type=jnp.float32)   # (BS, 128)

    attn = jnp.broadcast_to(bo, (BS, H))             # output-projection bias
    for h in range(HEADS):                           # HEADS=4, unrolled
        xA_h = xA[:, h * H:(h + 1) * H]              # (BS, H)
        xC_h = xC[:, h * H:(h + 1) * H]              # (BS, H)
        # scores = x A_h x^T  (scale already folded into A_h); contract last dims.
        sc = jax.lax.dot_general(xA_h, x, (((1,), (1,)), ((), ())),
                                 preferred_element_type=jnp.float32)   # (BS, BS)
        sc = sc + bias                               # block-diag + key-mask bias
        m = jnp.max(sc, axis=-1, keepdims=True)
        p = jnp.exp(sc - m)
        r = pl.reciprocal(jnp.sum(p, axis=-1, keepdims=True), approx=True)
        # deferred normalization: matmul on unnormalized p, scale afterwards,
        # so the EUP reciprocal overlaps with the MXU op.
        oh = jnp.dot(p, xC_h, preferred_element_type=jnp.float32)      # (BS, H)
        attn = attn + oh * r

    # ---- residual + layernorm 1 (dropout = identity in eval) ----
    y = _layernorm(x + attn, g1, be1)                                   # (BS, H)

    # ---- position-wise feed-forward (lane-dense padded hidden dim) ----
    h1 = jnp.dot(y, w1, preferred_element_type=jnp.float32) + b1        # (BS, 128)
    h1 = jnp.maximum(h1, 0.0)                        # padded cols are exact zeros
    h2 = jnp.dot(h1, w2_ref[...], preferred_element_type=jnp.float32) + b2  # (BS, H)

    # ---- residual + layernorm 2 ----
    z = _layernorm(y + h2, g2, be2)
    out_ref[...] = z.astype(out_ref.dtype)


def _full_spec(a):
    nd = a.ndim
    return pl.BlockSpec(a.shape, lambda i, nd=nd: (0,) * nd)


def encoder_layer(src, mask, params):
    (wq, wk, wv, wo, bo, g1, be1, w1, b1, w2, b2, g2, be2) = params

    # ---- host-side weight folding / packing (done once, outside the kernel) ----
    # torch Linear: y = x @ W.T ; 1/sqrt(head_size) folded into Q.
    wqT = wq.T * (1.0 / SCALE)                       # (H, H)
    wkT = wk.T
    wvT = wv.T
    woT = wo.T
    a_blocks, c_blocks = [], []
    for h in range(HEADS):
        sl = slice(h * HEAD, (h + 1) * HEAD)
        a_blocks.append(wqT[:, sl] @ wkT[:, sl].T)   # A_h = Wq_h/√d · Wk_h^T  (H, H)
        c_blocks.append(wvT[:, sl] @ woT[sl, :])     # C_h = Wv_h · Wo_h       (H, H)
    A = jnp.concatenate(a_blocks, axis=1)            # (H, HEADS*H) = (32, 128)
    C = jnp.concatenate(c_blocks, axis=1)            # (32, 128)
    # FFN weights, zero-padded to a full 128-lane tile (padded cols/rows cancel).
    w1pad = jnp.zeros((H, LANE), jnp.float32).at[:, :PF].set(w1.T)
    w2pad = jnp.zeros((LANE, H), jnp.float32).at[:PF, :].set(w2.T)
    slab = jnp.concatenate([A, C, w1pad], axis=1)    # (32, 384) single weight slab

    # pack the seven (1,D) vectors into one (8,128) buffer (one DMA, row-sliced).
    vecs = jnp.zeros((8, LANE), jnp.float32)
    vecs = vecs.at[0, :H].set(bo[0])
    vecs = vecs.at[1, :H].set(g1[0])
    vecs = vecs.at[2, :H].set(be1[0])
    vecs = vecs.at[3, :PF].set(b1[0])
    vecs = vecs.at[4, :H].set(b2[0])
    vecs = vecs.at[5, :H].set(g2[0])
    vecs = vecs.at[6, :H].set(be2[0])

    # ---- flatten activations and precompute additive mask bias ----
    x2d = src.reshape(BS, H)
    # bias[i, j] = 0 if (same batch) and (key j unmasked) else -1e30.
    # Block-diagonal structure lets one (BS, BS) score matrix per head serve
    # both batch elements with zero cross-batch attention weight.
    row_b = jnp.arange(BS, dtype=jnp.int32)[:, None] // S
    col_b = jnp.arange(BS, dtype=jnp.int32)[None, :] // S
    key_ok = (mask[:, 0, :] != 0).reshape(BS)        # (BS,)
    allow = (row_b == col_b) & key_ok[None, :]
    bias = jnp.where(allow, 0.0, -1e30).astype(jnp.float32)   # (BS, BS)

    out2d = pl.pallas_call(
        encoder_layer_kernel,
        out_shape=jax.ShapeDtypeStruct((BS, H), jnp.float32),
        grid_spec=pltpu.PrefetchScalarGridSpec(
            num_scalar_prefetch=0,
            grid=(1,),
            in_specs=[
                _full_spec(x2d), _full_spec(bias),
                _full_spec(slab), _full_spec(w2pad), _full_spec(vecs),
            ],
            out_specs=pl.BlockSpec((BS, H), lambda i: (0, 0)),
        ),
        compiler_params=pltpu.CompilerParams(dimension_semantics=("arbitrary",)),
    )(x2d, bias, slab, w2pad, vecs)

    return out2d.reshape(B, S, H)


# ---------------- pure-JAX reference (mirrors PyTorch semantics) ----------------
def reference(src, mask, params):
    (wq, wk, wv, wo, bo, g1, be1, w1, b1, w2, b2, g2, be2) = params

    def ln(x, g, b):
        mu = jnp.mean(x, axis=-1, keepdims=True)
        var = jnp.mean((x - mu) ** 2, axis=-1, keepdims=True)
        return (x - mu) * jax.lax.rsqrt(var + EPS) * g[0] + b[0]

    q = src @ wq.T
    k = src @ wk.T
    v = src @ wv.T
    q = q.reshape(B, S, HEADS, HEAD).transpose(0, 2, 1, 3)
    k = k.reshape(B, S, HEADS, HEAD).transpose(0, 2, 3, 1)
    v = v.reshape(B, S, HEADS, HEAD).transpose(0, 2, 1, 3)
    sc = jnp.matmul(q, k) / SCALE                          # (B, heads, S, S)
    sc = jnp.where(mask[:, None, :, :] == 0, -jnp.inf, sc)
    attn = jax.nn.softmax(sc, axis=3)
    x = jnp.matmul(attn, v).transpose(0, 2, 1, 3).reshape(B, S, H)
    x = x @ wo.T + bo[0]
    y = ln(src + x, g1, be1)
    ff = jnp.maximum(y @ w1.T + b1[0], 0.0) @ w2.T + b2[0]
    return ln(y + ff, g2, be2)


if __name__ == "__main__":
    key = jax.random.PRNGKey(0)
    ks = jax.random.split(key, 16)

    def init(k, shape, scale=0.1):
        return (jax.random.normal(k, shape, jnp.float32) * scale)

    wq = init(ks[0], (H, H))
    wk = init(ks[1], (H, H))
    wv = init(ks[2], (H, H))
    wo = init(ks[3], (H, H))
    bo = init(ks[4], (1, H))
    g1 = jnp.ones((1, H), jnp.float32)
    be1 = jnp.zeros((1, H), jnp.float32)
    w1 = init(ks[5], (PF, H))
    b1 = init(ks[6], (1, PF))
    w2 = init(ks[7], (H, PF))
    b2 = init(ks[8], (1, H))
    g2 = jnp.ones((1, H), jnp.float32)
    be2 = jnp.zeros((1, H), jnp.float32)
    params = (wq, wk, wv, wo, bo, g1, be1, w1, b1, w2, b2, g2, be2)

    src = jax.random.normal(ks[9], (B, S, H), jnp.float32)
    # mask: keep everything except the last two key positions of batch 1
    mask = jnp.ones((B, 1, S), jnp.float32)
    mask = mask.at[1, 0, -2:].set(0.0)

    out = encoder_layer(src, mask, params)
    out = jax.block_until_ready(out)

    ref = reference(src, mask, params)
    assert out.shape == (B, S, H)
    # Tolerance 2e-3: the softmax normalization uses the EUP approximate
    # reciprocal and the host-side weight folding changes rounding order slightly.
    assert jnp.allclose(out, ref, atol=2e-3, rtol=2e-3), "mismatch vs reference"
    print("KERNEL_OK")
</pallas_src>

<mosaic_0001>
module attributes {stable_mosaic.version = 11 : i64} {
  func.func @encoder_layer_kernel(%arg0: i32, %arg1: memref<16x32xf32, #tpu.memory_space<vmem>>, %arg2: memref<16x16xf32, #tpu.memory_space<vmem>>, %arg3: memref<32x384xf32, #tpu.memory_space<vmem>>, %arg4: memref<128x32xf32, #tpu.memory_space<vmem>>, %arg5: memref<8x128xf32, #tpu.memory_space<vmem>>, %arg6: memref<16x32xf32, #tpu.memory_space<vmem>>) attributes {dimension_semantics = [#tpu.dimension_semantics<arbitrary>], iteration_bounds = array<i64: 1>, scalar_prefetch = 0 : i64, scratch_operands = 0 : i64, tpu.core_type = #tpu.core_type<tc>, window_params = [{pipeline_mode = #tpu.pipeline_mode<synchronous>, transform_indices = @transform_0, window_bounds = array<i64: 16, 32>}, {pipeline_mode = #tpu.pipeline_mode<synchronous>, transform_indices = @transform_1, window_bounds = array<i64: 16, 16>}, {pipeline_mode = #tpu.pipeline_mode<synchronous>, transform_indices = @transform_2, window_bounds = array<i64: 32, 384>}, {pipeline_mode = #tpu.pipeline_mode<synchronous>, transform_indices = @transform_3, window_bounds = array<i64: 128, 32>}, {pipeline_mode = #tpu.pipeline_mode<synchronous>, transform_indices = @transform_4, window_bounds = array<i64: 8, 128>}, {pipeline_mode = #tpu.pipeline_mode<synchronous>, transform_indices = @transform_5, window_bounds = array<i64: 16, 32>}]} {
    %c0 = arith.constant 0 : index
    %c0_0 = arith.constant 0 : index
    %0 = vector.load %arg1[%c0, %c0_0] : memref<16x32xf32, #tpu.memory_space<vmem>>, vector<16x32xf32>
    %c0_1 = arith.constant 0 : index
    %c0_2 = arith.constant 0 : index
    %1 = vector.load %arg2[%c0_1, %c0_2] : memref<16x16xf32, #tpu.memory_space<vmem>>, vector<16x16xf32>
    %c0_3 = arith.constant 0 : index
    %c0_4 = arith.constant 0 : index
    %2 = vector.load %arg3[%c0_3, %c0_4] : memref<32x384xf32, #tpu.memory_space<vmem>>, vector<32x384xf32>
    %c0_5 = arith.constant 0 : index
    %c0_6 = arith.constant 0 : index
    %3 = vector.load %arg5[%c0_5, %c0_6] : memref<8x128xf32, #tpu.memory_space<vmem>>, vector<8x128xf32>
    %4 = vector.extract_strided_slice %3 {offsets = [0, 0], sizes = [1, 32], strides = [1, 1]} : vector<8x128xf32> to vector<1x32xf32>
    %5 = vector.extract_strided_slice %3 {offsets = [1, 0], sizes = [1, 32], strides = [1, 1]} : vector<8x128xf32> to vector<1x32xf32>
    %6 = vector.extract_strided_slice %3 {offsets = [2, 0], sizes = [1, 32], strides = [1, 1]} : vector<8x128xf32> to vector<1x32xf32>
    %7 = vector.extract_strided_slice %3 {offsets = [3, 0], sizes = [1, 128], strides = [1, 1]} : vector<8x128xf32> to vector<1x128xf32>
    %8 = vector.extract_strided_slice %3 {offsets = [4, 0], sizes = [1, 32], strides = [1, 1]} : vector<8x128xf32> to vector<1x32xf32>
    %9 = vector.extract_strided_slice %3 {offsets = [5, 0], sizes = [1, 32], strides = [1, 1]} : vector<8x128xf32> to vector<1x32xf32>
    %10 = vector.extract_strided_slice %3 {offsets = [6, 0], sizes = [1, 32], strides = [1, 1]} : vector<8x128xf32> to vector<1x32xf32>
    %11 = vector.extract_strided_slice %2 {offsets = [0, 0], sizes = [32, 128], strides = [1, 1]} : vector<32x384xf32> to vector<32x128xf32>
    %12 = vector.extract_strided_slice %2 {offsets = [0, 128], sizes = [32, 128], strides = [1, 1]} : vector<32x384xf32> to vector<32x128xf32>
    %13 = vector.extract_strided_slice %2 {offsets = [0, 256], sizes = [32, 128], strides = [1, 1]} : vector<32x384xf32> to vector<32x128xf32>
    %cst = arith.constant dense<0.000000e+00> : vector<16x128xf32>
    %14 = tpu.matmul %0, %11, %cst {dimension_numbers = #tpu.dot_dimension_numbers<[1], [0], [0], [1], [0, 0, 1, 1], [], []>} : vector<16x32xf32>, vector<32x128xf32>, vector<16x128xf32> -> vector<16x128xf32>
    %cst_7 = arith.constant dense<0.000000e+00> : vector<16x128xf32>
    %15 = tpu.matmul %0, %12, %cst_7 {dimension_numbers = #tpu.dot_dimension_numbers<[1], [0], [0], [1], [0, 0, 1, 1], [], []>} : vector<16x32xf32>, vector<32x128xf32>, vector<16x128xf32> -> vector<16x128xf32>
    %16 = vector.shape_cast %4 : vector<1x32xf32> to vector<1x32xf32>
    %17 = vector.broadcast %16 : vector<1x32xf32> to vector<16x32xf32>
    %18 = vector.extract_strided_slice %14 {offsets = [0, 0], sizes = [16, 32], strides = [1, 1]} : vector<16x128xf32> to vector<16x32xf32>
    %19 = vector.extract_strided_slice %15 {offsets = [0, 0], sizes = [16, 32], strides = [1, 1]} : vector<16x128xf32> to vector<16x32xf32>
    %cst_8 = arith.constant dense<0.000000e+00> : vector<16x16xf32>
    %20 = tpu.matmul %18, %0, %cst_8 {dimension_numbers = #tpu.dot_dimension_numbers<[1], [1], [0], [0], [0, 0, 1, 0], [], []>} : vector<16x32xf32>, vector<16x32xf32>, vector<16x16xf32> -> vector<16x16xf32>
    %21 = arith.addf %20, %1 : vector<16x16xf32>
    %cst_9 = arith.constant dense<0xFF800000> : vector<16xf32>
    %22 = vector.multi_reduction <maximumf>, %21, %cst_9 [1] : vector<16x16xf32> to vector<16xf32>
    %23 = vector.shape_cast %22 : vector<16xf32> to vector<16x1xf32>
    %24 = vector.broadcast %23 : vector<16x1xf32> to vector<16x16xf32>
    %25 = arith.subf %21, %24 : vector<16x16xf32>
    %26 = math.exp %25 : vector<16x16xf32>
    %cst_10 = arith.constant dense<0.000000e+00> : vector<16xf32>
    %27 = vector.multi_reduction <add>, %26, %cst_10 [1] : vector<16x16xf32> to vector<16xf32>
    %28 = vector.shape_cast %27 : vector<16xf32> to vector<16x1xf32>
    %29 = tpu.reciprocal %28 {approx = true} : vector<16x1xf32> -> vector<16x1xf32>
    %cst_11 = arith.constant dense<0.000000e+00> : vector<16x32xf32>
    %30 = tpu.matmul %26, %19, %cst_11 {dimension_numbers = #tpu.dot_dimension_numbers<[1], [0], [0], [1], [0, 0, 1, 1], [], []>} : vector<16x16xf32>, vector<16x32xf32>, vector<16x32xf32> -> vector<16x32xf32>
    %31 = vector.broadcast %29 : vector<16x1xf32> to vector<16x32xf32>
    %32 = arith.mulf %30, %31 : vector<16x32xf32>
    %33 = arith.addf %17, %32 : vector<16x32xf32>
    %34 = vector.extract_strided_slice %14 {offsets = [0, 32], sizes = [16, 32], strides = [1, 1]} : vector<16x128xf32> to vector<16x32xf32>
    %35 = vector.extract_strided_slice %15 {offsets = [0, 32], sizes = [16, 32], strides = [1, 1]} : vector<16x128xf32> to vector<16x32xf32>
    %cst_12 = arith.constant dense<0.000000e+00> : vector<16x16xf32>
    %36 = tpu.matmul %34, %0, %cst_12 {dimension_numbers = #tpu.dot_dimension_numbers<[1], [1], [0], [0], [0, 0, 1, 0], [], []>} : vector<16x32xf32>, vector<16x32xf32>, vector<16x16xf32> -> vector<16x16xf32>
    %37 = arith.addf %36, %1 : vector<16x16xf32>
    %cst_13 = arith.constant dense<0xFF800000> : vector<16xf32>
    %38 = vector.multi_reduction <maximumf>, %37, %cst_13 [1] : vector<16x16xf32> to vector<16xf32>
    %39 = vector.shape_cast %38 : vector<16xf32> to vector<16x1xf32>
    %40 = vector.broadcast %39 : vector<16x1xf32> to vector<16x16xf32>
    %41 = arith.subf %37, %40 : vector<16x16xf32>
    %42 = math.exp %41 : vector<16x16xf32>
    %cst_14 = arith.constant dense<0.000000e+00> : vector<16xf32>
    %43 = vector.multi_reduction <add>, %42, %cst_14 [1] : vector<16x16xf32> to vector<16xf32>
    %44 = vector.shape_cast %43 : vector<16xf32> to vector<16x1xf32>
    %45 = tpu.reciprocal %44 {approx = true} : vector<16x1xf32> -> vector<16x1xf32>
    %cst_15 = arith.constant dense<0.000000e+00> : vector<16x32xf32>
    %46 = tpu.matmul %42, %35, %cst_15 {dimension_numbers = #tpu.dot_dimension_numbers<[1], [0], [0], [1], [0, 0, 1, 1], [], []>} : vector<16x16xf32>, vector<16x32xf32>, vector<16x32xf32> -> vector<16x32xf32>
    %47 = vector.broadcast %45 : vector<16x1xf32> to vector<16x32xf32>
    %48 = arith.mulf %46, %47 : vector<16x32xf32>
    %49 = arith.addf %33, %48 : vector<16x32xf32>
    %50 = vector.extract_strided_slice %14 {offsets = [0, 64], sizes = [16, 32], strides = [1, 1]} : vector<16x128xf32> to vector<16x32xf32>
    %51 = vector.extract_strided_slice %15 {offsets = [0, 64], sizes = [16, 32], strides = [1, 1]} : vector<16x128xf32> to vector<16x32xf32>
    %cst_16 = arith.constant dense<0.000000e+00> : vector<16x16xf32>
    %52 = tpu.matmul %50, %0, %cst_16 {dimension_numbers = #tpu.dot_dimension_numbers<[1], [1], [0], [0], [0, 0, 1, 0], [], []>} : vector<16x32xf32>, vector<16x32xf32>, vector<16x16xf32> -> vector<16x16xf32>
    %53 = arith.addf %52, %1 : vector<16x16xf32>
    %cst_17 = arith.constant dense<0xFF800000> : vector<16xf32>
    %54 = vector.multi_reduction <maximumf>, %53, %cst_17 [1] : vector<16x16xf32> to vector<16xf32>
    %55 = vector.shape_cast %54 : vector<16xf32> to vector<16x1xf32>
    %56 = vector.broadcast %55 : vector<16x1xf32> to vector<16x16xf32>
    %57 = arith.subf %53, %56 : vector<16x16xf32>
    %58 = math.exp %57 : vector<16x16xf32>
    %cst_18 = arith.constant dense<0.000000e+00> : vector<16xf32>
    %59 = vector.multi_reduction <add>, %58, %cst_18 [1] : vector<16x16xf32> to vector<16xf32>
    %60 = vector.shape_cast %59 : vector<16xf32> to vector<16x1xf32>
    %61 = tpu.reciprocal %60 {approx = true} : vector<16x1xf32> -> vector<16x1xf32>
    %cst_19 = arith.constant dense<0.000000e+00> : vector<16x32xf32>
    %62 = tpu.matmul %58, %51, %cst_19 {dimension_numbers = #tpu.dot_dimension_numbers<[1], [0], [0], [1], [0, 0, 1, 1], [], []>} : vector<16x16xf32>, vector<16x32xf32>, vector<16x32xf32> -> vector<16x32xf32>
    %63 = vector.broadcast %61 : vector<16x1xf32> to vector<16x32xf32>
    %64 = arith.mulf %62, %63 : vector<16x32xf32>
    %65 = arith.addf %49, %64 : vector<16x32xf32>
    %66 = vector.extract_strided_slice %14 {offsets = [0, 96], sizes = [16, 32], strides = [1, 1]} : vector<16x128xf32> to vector<16x32xf32>
    %67 = vector.extract_strided_slice %15 {offsets = [0, 96], sizes = [16, 32], strides = [1, 1]} : vector<16x128xf32> to vector<16x32xf32>
    %cst_20 = arith.constant dense<0.000000e+00> : vector<16x16xf32>
    %68 = tpu.matmul %66, %0, %cst_20 {dimension_numbers = #tpu.dot_dimension_numbers<[1], [1], [0], [0], [0, 0, 1, 0], [], []>} : vector<16x32xf32>, vector<16x32xf32>, vector<16x16xf32> -> vector<16x16xf32>
    %69 = arith.addf %68, %1 : vector<16x16xf32>
    %cst_21 = arith.constant dense<0xFF800000> : vector<16xf32>
    %70 = vector.multi_reduction <maximumf>, %69, %cst_21 [1] : vector<16x16xf32> to vector<16xf32>
    %71 = vector.shape_cast %70 : vector<16xf32> to vector<16x1xf32>
    %72 = vector.broadcast %71 : vector<16x1xf32> to vector<16x16xf32>
    %73 = arith.subf %69, %72 : vector<16x16xf32>
    %74 = math.exp %73 : vector<16x16xf32>
    %cst_22 = arith.constant dense<0.000000e+00> : vector<16xf32>
    %75 = vector.multi_reduction <add>, %74, %cst_22 [1] : vector<16x16xf32> to vector<16xf32>
    %76 = vector.shape_cast %75 : vector<16xf32> to vector<16x1xf32>
    %77 = tpu.reciprocal %76 {approx = true} : vector<16x1xf32> -> vector<16x1xf32>
    %cst_23 = arith.constant dense<0.000000e+00> : vector<16x32xf32>
    %78 = tpu.matmul %74, %67, %cst_23 {dimension_numbers = #tpu.dot_dimension_numbers<[1], [0], [0], [1], [0, 0, 1, 1], [], []>} : vector<16x16xf32>, vector<16x32xf32>, vector<16x32xf32> -> vector<16x32xf32>
    %79 = vector.broadcast %77 : vector<16x1xf32> to vector<16x32xf32>
    %80 = arith.mulf %78, %79 : vector<16x32xf32>
    %81 = arith.addf %65, %80 : vector<16x32xf32>
    %82 = arith.addf %0, %81 : vector<16x32xf32>
    %cst_24 = arith.constant dense<0.000000e+00> : vector<16xf32>
    %83 = vector.multi_reduction <add>, %82, %cst_24 [1] : vector<16x32xf32> to vector<16xf32>
    %84 = vector.shape_cast %83 : vector<16xf32> to vector<16x1xf32>
    %cst_25 = arith.constant 3.200000e+01 : f32
    %85 = vector.broadcast %cst_25 : f32 to vector<16x1xf32>
    %86 = arith.divf %84, %85 : vector<16x1xf32>
    %87 = vector.broadcast %86 : vector<16x1xf32> to vector<16x32xf32>
    %88 = arith.subf %82, %87 : vector<16x32xf32>
    %89 = arith.mulf %88, %88 : vector<16x32xf32>
    %cst_26 = arith.constant dense<0.000000e+00> : vector<16xf32>
    %90 = vector.multi_reduction <add>, %89, %cst_26 [1] : vector<16x32xf32> to vector<16xf32>
    %91 = vector.shape_cast %90 : vector<16xf32> to vector<16x1xf32>
    %cst_27 = arith.constant 3.200000e+01 : f32
    %92 = vector.broadcast %cst_27 : f32 to vector<16x1xf32>
    %93 = arith.divf %91, %92 : vector<16x1xf32>
    %cst_28 = arith.constant 9.99999974E-6 : f32
    %94 = vector.broadcast %cst_28 : f32 to vector<16x1xf32>
    %95 = arith.addf %93, %94 : vector<16x1xf32>
    %96 = math.rsqrt %95 : vector<16x1xf32>
    %97 = vector.broadcast %86 : vector<16x1xf32> to vector<16x32xf32>
    %98 = arith.subf %82, %97 : vector<16x32xf32>
    %99 = vector.broadcast %96 : vector<16x1xf32> to vector<16x32xf32>
    %100 = arith.mulf %98, %99 : vector<16x32xf32>
    %101 = vector.broadcast %5 : vector<1x32xf32> to vector<16x32xf32>
    %102 = arith.mulf %100, %101 : vector<16x32xf32>
    %103 = vector.broadcast %6 : vector<1x32xf32> to vector<16x32xf32>
    %104 = arith.addf %102, %103 : vector<16x32xf32>
    %cst_29 = arith.constant dense<0.000000e+00> : vector<16x128xf32>
    %105 = tpu.matmul %104, %13, %cst_29 {dimension_numbers = #tpu.dot_dimension_numbers<[1], [0], [0], [1], [0, 0, 1, 1], [], []>} : vector<16x32xf32>, vector<32x128xf32>, vector<16x128xf32> -> vector<16x128xf32>
    %106 = vector.broadcast %7 : vector<1x128xf32> to vector<16x128xf32>
    %107 = arith.addf %105, %106 : vector<16x128xf32>
    %cst_30 = arith.constant 0.000000e+00 : f32
    %108 = vector.broadcast %cst_30 : f32 to vector<16x128xf32>
    %109 = arith.maximumf %107, %108 : vector<16x128xf32>
    %c0_31 = arith.constant 0 : index
    %c0_32 = arith.constant 0 : index
    %110 = vector.load %arg4[%c0_31, %c0_32] : memref<128x32xf32, #tpu.memory_space<vmem>>, vector<128x32xf32>
    %cst_33 = arith.constant dense<0.000000e+00> : vector<16x32xf32>
    %111 = tpu.matmul %109, %110, %cst_33 {dimension_numbers = #tpu.dot_dimension_numbers<[1], [0], [0], [1], [0, 0, 1, 1], [], []>} : vector<16x128xf32>, vector<128x32xf32>, vector<16x32xf32> -> vector<16x32xf32>
    %112 = vector.broadcast %8 : vector<1x32xf32> to vector<16x32xf32>
    %113 = arith.addf %111, %112 : vector<16x32xf32>
    %114 = arith.addf %104, %113 : vector<16x32xf32>
    %cst_34 = arith.constant dense<0.000000e+00> : vector<16xf32>
    %115 = vector.multi_reduction <add>, %114, %cst_34 [1] : vector<16x32xf32> to vector<16xf32>
    %116 = vector.shape_cast %115 : vector<16xf32> to vector<16x1xf32>
    %cst_35 = arith.constant 3.200000e+01 : f32
    %117 = vector.broadcast %cst_35 : f32 to vector<16x1xf32>
    %118 = arith.divf %116, %117 : vector<16x1xf32>
    %119 = vector.broadcast %118 : vector<16x1xf32> to vector<16x32xf32>
    %120 = arith.subf %114, %119 : vector<16x32xf32>
    %121 = arith.mulf %120, %120 : vector<16x32xf32>
    %cst_36 = arith.constant dense<0.000000e+00> : vector<16xf32>
    %122 = vector.multi_reduction <add>, %121, %cst_36 [1] : vector<16x32xf32> to vector<16xf32>
    %123 = vector.shape_cast %122 : vector<16xf32> to vector<16x1xf32>
    %cst_37 = arith.constant 3.200000e+01 : f32
    %124 = vector.broadcast %cst_37 : f32 to vector<16x1xf32>
    %125 = arith.divf %123, %124 : vector<16x1xf32>
    %cst_38 = arith.constant 9.99999974E-6 : f32
    %126 = vector.broadcast %cst_38 : f32 to vector<16x1xf32>
    %127 = arith.addf %125, %126 : vector<16x1xf32>
    %128 = math.rsqrt %127 : vector<16x1xf32>
    %129 = vector.broadcast %118 : vector<16x1xf32> to vector<16x32xf32>
    %130 = arith.subf %114, %129 : vector<16x32xf32>
    %131 = vector.broadcast %128 : vector<16x1xf32> to vector<16x32xf32>
    %132 = arith.mulf %130, %131 : vector<16x32xf32>
    %133 = vector.broadcast %9 : vector<1x32xf32> to vector<16x32xf32>
    %134 = arith.mulf %132, %133 : vector<16x32xf32>
    %135 = vector.broadcast %10 : vector<1x32xf32> to vector<16x32xf32>
    %136 = arith.addf %134, %135 : vector<16x32xf32>
    %c0_39 = arith.constant 0 : index
    %c0_40 = arith.constant 0 : index
    %137 = vector.load %arg6[%c0_39, %c0_40] : memref<16x32xf32, #tpu.memory_space<vmem>>, vector<16x32xf32>
    tpu.vector_store %arg6[%c0_39, %c0_40], %136 {strides = array<i32>} : memref<16x32xf32, #tpu.memory_space<vmem>>, vector<16x32xf32>,
    return
  }
  func.func @transform_0(%arg0: i32) -> (i32, i32) {
    %c0_i32 = arith.constant 0 : i32
    %c0_i32_0 = arith.constant 0 : i32
    %c0_i32_1 = arith.constant 0 : i32
    return %c0_i32, %c0_i32_0 : i32, i32
  }
  func.func @transform_1(%arg0: i32) -> (i32, i32) {
    %c0_i32 = arith.constant 0 : i32
    %c0_i32_0 = arith.constant 0 : i32
    %c0_i32_1 = arith.constant 0 : i32
    return %c0_i32, %c0_i32_0 : i32, i32
  }
  func.func @transform_2(%arg0: i32) -> (i32, i32) {
    %c0_i32 = arith.constant 0 : i32
    %c0_i32_0 = arith.constant 0 : i32
    %c0_i32_1 = arith.constant 0 : i32
    return %c0_i32, %c0_i32_0 : i32, i32
  }
  func.func @transform_3(%arg0: i32) -> (i32, i32) {
    %c0_i32 = arith.constant 0 : i32
    %c0_i32_0 = arith.constant 0 : i32
    %c0_i32_1 = arith.constant 0 : i32
    return %c0_i32, %c0_i32_0 : i32, i32
  }
  func.func @transform_4(%arg0: i32) -> (i32, i32) {
    %c0_i32 = arith.constant 0 : i32
    %c0_i32_0 = arith.constant 0 : i32
    %c0_i32_1 = arith.constant 0 : i32
    return %c0_i32, %c0_i32_0 : i32, i32
  }
  func.func @transform_5(%arg0: i32) -> (i32, i32) {
    %c0_i32 = arith.constant 0 : i32
    %c0_i32_0 = arith.constant 0 : i32
    %c0_i32_1 = arith.constant 0 : i32
    return %c0_i32, %c0_i32_0 : i32, i32
  }
}

</mosaic_0001>

<bundles_post_ra>
// kernel: tpu_custom_call.1
= control target key start
LH: loop header
LB: loop body
LE: loop exit
PB: predicated region body
PF: predicated region fallthrough
CT: control target
= control target key end

     0   :  { %vm38_vm0 = vcmask 261120   ;;  %s1985_s0 = inlined_call_operand.vmem [shape: f32[16,32], index: 0, kind: input, shape index: {}]   ;;  %s1986_s1 = inlined_call_operand.vmem [shape: f32[16,16], index: 1, kind: input, shape index: {}]   ;;  %s1987_s2 = inlined_call_operand.vmem [shape: f32[32,384], index: 2, kind: input, shape index: {}]   ;;  %s1988_s3 = inlined_call_operand.vmem [shape: f32[128,32], index: 3, kind: input, shape index: {}]   ;;  %s1989_s4 = inlined_call_operand.vmem [shape: f32[8,128], index: 4, kind: input, shape index: {}]   ;;  %s1990_s5 = inlined_call_operand.hbm [shape: f32[16,32], index: 5, kind: output, shape index: {}]  }
   0x1   :  { %v25_v0 = vld [vmem:[%s1987_s2] sm:$0xff]  ;;  %v28_v1 = vld [vmem:[%s1987_s2 + $0x18] sm:$0xff]  ;;  %v31_v2 = vld [vmem:[%s1987_s2 + $0x30] sm:$0xff] }
   0x2   :  { %v1473_v3 = vpack.c.bf16 %v28_v1, %v25_v0  ;;  %v34_v4 = vld [vmem:[%s1987_s2 + $0x48] sm:$0xff]  ;;  %v1705_v5 = vld [vmem:[%s1985_s0] sm:$0xff]  ;;  %vm1726_vm1 = vmpackc.low %vm38_vm0, %vm38_vm0 }
   0x3   :  { %v1710_v6 = vld [vmem:[%s1985_s0 + $0x8] sm:$0xff]  ;;  %v1477_v7 = vpack.c.bf16 %v34_v4, %v31_v2  ;;  %1357 = vmatprep.mubr.msk.f32.mxu0 %vm38_vm0, %v1705_v5  ;;  %v29_v10 = vld [vmem:[%s1987_s2 + $0x20] sm:$0xff] }
   0x4   :  { %v1716_v8 = vpack.c.bf16 %v1710_v6, %v1705_v5  ;;  %v26_v9 = vld [vmem:[%s1987_s2 + $0x8] sm:$0xff]  ;;  %1474 = vmatprep.subr.bf16.mxu0 %v1473_v3 }
   0x5   :  { %1476 = vmatpush3.bf16.msra.mxu0 %v1473_v3 }
   0x6   :  { %1501 = vmatprep.subr.msk.bf16.mxu1 %vm1726_vm1, %v1716_v8 }
   0x7   :  { %10 = vsyncpa [#allocation3], 0  ;;  %1478 = vmatprep.subr.bf16.mxu0 %v1477_v7  ;;  %v1481_v12 = vpack.c.bf16 %v29_v10, %v26_v9  ;;  %1504 = vmatpush3.bf16.xpose.msk.msra.mxu1 %vm1726_vm1, %v1716_v8  ;;  %v32_v13 = vld [vmem:[%s1987_s2 + $0x38] sm:$0xff]  ;;  %v35_v14 = vld [vmem:[%s1987_s2 + $0x50] sm:$0xff]  ;;  %s1654_s12 = smov 96   ;;  %vm280_vm2 = vcmask 130048  }
   0x8   :  { %v1485_v15 = vpack.c.bf16 %v35_v14, %v32_v13  ;;  %v1773_v24 = vld [vmem:[%s1986_s1 + $0x8] sm:$0xff]  ;;  %v1778_v26 = vld [vmem:[%s1986_s1] sm:$0xff]  ;;  %s1655_s1 = smov 64   ;;  %s1656_s17 = smov 32  }
   0x9   :  { %1480 = vmatpush3.bf16.msra.mxu0 %v1477_v7 }
   0xa   :  { %1482 = vmatprep.subr.bf16.mxu0 %v1481_v12 }
   0xc   :  { %1358 = vmatmul.mubr.msk.f32.vlgmr.msra.gmra.mrb[0].mxu0 %vm38_vm0, %v1710_v6 }
   0xd   :  { %1484 = vmatpush3.bf16.msra.mxu0 %v1481_v12  ;;  %1368 = vmatprep.mubr.msk.f32.mxu0 %vm38_vm0, %v1705_v5 }
   0xe   :  { %1486 = vmatprep.subr.bf16.mxu0 %v1485_v15 }
  0x11   :  { %1488 = vmatpush3.bf16.msra.mxu0 %v1485_v15 }
  0x12   :  { %1491 = vmatprep.subr.msk.bf16.mxu0 %vm1726_vm1, %v1716_v8 }
  0x14   :  { %1369 = vmatmul.mubr.msk.f32.vlgmr.msra.gmra.mrb[2].mxu0 %vm38_vm0, %v1710_v6 }
  0x1a   :  { %1494 = vmatpush3.bf16.xpose.msk.msra.mxu0 %vm1726_vm1, %v1716_v8 }
  0xdf   :  { %v1754_v16 = vpop.f32.mrb[0].mxu0 }
  0xe0   :  { %v1756_v17 = vpop.f32.mrb[1].mxu0 }
  0xe1   :  { %386 = vrot.lane.b32.xlu0 %v1756_v17, %s1654_s12  ;;  %1375 = vmatprep.mubr.msk.f32.mxu0 %vm38_vm0, %v1756_v17 }
  0xe2   :  { %1376 = vmatmul.mubr.msk.f32.vlgmr.msra.gmra.mrb[4].mxu0 %vm38_vm0, %v1754_v16 }
  0xe5   :  { %388 = vrot.lane.b32.xlu0 %v1754_v16, %s1654_s12 }
  0xe7   :  { %v1370_v18 = vpop.f32.mrb[2].mxu0 }
  0xe8   :  { %v186_v19 = vpop.f32.mrb[3].mxu0 }
  0xe9   :  { %v1495_v20 = vpack.c.bf16 %v1370_v18, %v186_v19  ;;  %v1768_v23 = vpack.i.bf16 %v1370_v18, %v186_v19 }
  0xeb   :  { %1496 = vmatprep.subr.bf16.mxu0 %v1495_v20 }
  0xec   :  { %1498 = vmatpush3.bf16.msra.mxu0 %v1495_v20 }
 0x153   :  { %v387_v21 = vpop.permute.xlu0 %386 }
 0x154   :  { %1389 = vmatprep.mubr.msk.f32.mxu1 %vm38_vm0, %v387_v21 }
 0x157   :  { %v389_v22 = vpop.permute.xlu0 %388 }
 0x158   :  { %1390 = vmatmul.mubr.msk.f32.vlgmr.msra.gmra.mrb[0].mxu1 %vm38_vm0, %v389_v22 }
 0x1b5   :  { %v1377_v25 = vpop.f32.mrb[4].mxu0 }
 0x1b6   :  { %v277_v27 = vadd.f32 %v1377_v25, %v1773_v24  ;;  %v271_v28 = vpop.f32.mrb[5].mxu0 }
 0x1b7   :  { %v272_v29 = vadd.f32 %v271_v28, %v1778_v26 }
 0x1b8   :  { %v284_v30 = vsel %vm280_vm2, %v277_v27, -inf }
 0x1b9   :  { %285 = vmax.xlane.f32.xlu1 %v284_v30  ;;  %v281_v31 = vsel %vm280_vm2, %v272_v29, -inf }
 0x1bd   :  { %282 = vmax.xlane.f32.xlu1 %v281_v31 }
 0x22b   :  { %v1391_v32 = vpop.f32.mrb[0].mxu1 }
 0x22c   :  { %v466_v33 = vadd.f32 %v1391_v32, %v1773_v24  ;;  %v460_v34 = vpop.f32.mrb[1].mxu1 }
 0x22d   :  { %v461_v35 = vadd.f32 %v460_v34, %v1778_v26 }
 0x22e   :  { %v472_v36 = vsel %vm280_vm2, %v466_v33, -inf }
 0x22f   :  { %473 = vmax.xlane.f32.xlu1 %v472_v36  ;;  %v469_v37 = vsel %vm280_vm2, %v461_v35, -inf }
 0x230   :  { %470 = vmax.xlane.f32.xlu0 %v469_v37 }
 0x240   :  { %1576 = vrot.lane.b32.xlu1 %v1768_v23, %s1654_s12 }
 0x244   :  { %582 = vrot.lane.b32.xlu1 %v1756_v17, %s1655_s1 }
 0x246   :  { %v286_v38 = vpop.xlane.xlu1 %285 }
 0x247   :  { %v288_v39 = vsub.f32 %v277_v27, %v286_v38 }
 0x248   :  { %584 = vrot.lane.b32.xlu1 %v1754_v16, %s1655_s1 }
 0x249   :  { %v291_v42 = vmul.f32 1.442695, %v288_v39 }
 0x24a   :  { %v283_v40 = vpop.xlane.xlu1 %282 }
 0x24b   :  { %v287_v41 = vsub.f32 %v272_v29, %v283_v40 }
 0x24d   :  { %v289_v43 = vmul.f32 1.442695, %v287_v41 }
 0x24f   :  { %1590 = vpow2.f32 %v289_v43 }
 0x250   :  { %1592 = vpow2.f32 %v291_v42 }
 0x259   :  { %v1794_v44 = vpop.eup %1590 }
 0x25a   :  { %v1796_v45 = vpop.eup %1592  ;;  %1382 = vmatprep.mubr.msk.f32.mxu0 %vm280_vm2, %v1794_v44  ;;  %v293_v36 = vsel %vm280_vm2, %v1794_v44, 0.0 }
 0x25b   :  { %1383 = vmatmul.mubr.msk.f32.vlgmr.msra.gmra.mrb[6].mxu0 %vm280_vm2, %v1796_v45  ;;  %v296_v11 = vsel %vm280_vm2, %v1796_v45, 0.0 }
 0x2bc   :  { %v474_v46 = vpop.xlane.xlu1 %473 }
 0x2bd   :  { %v476_v47 = vsub.f32 %v466_v33, %v474_v46  ;;  %v471_v48 = vpop.xlane.xlu0 %470 }
 0x2be   :  { %v475_v49 = vsub.f32 %v461_v35, %v471_v48 }
 0x2bf   :  { %v479_v50 = vmul.f32 1.442695, %v476_v47 }
 0x2c0   :  { %v477_v51 = vmul.f32 1.442695, %v475_v49  ;;  %v1577_v52 = vpop.permute.xlu1 %1576  ;;  %v195_v49 = vlaneseq }
 0x2c1   :  { %v1579_v53 = vunpack.i.h.bf16 %v1577_v52  ;;  %v1578_v54 = vunpack.i.l.bf16 %v1577_v52 }
 0x2c2   :  { %1594 = vpow2.f32 %v477_v51 }
 0x2c3   :  { %1596 = vpow2.f32 %v479_v50  ;;  %v1505_v55 = vpack.c.bf16 %v1579_v53, %v1578_v54  ;;  %v1858_v50 = vshrl.u32 %v195_v49, 7 }
 0x2c4   :  { %v583_v58 = vpop.permute.xlu1 %582 }
 0x2c5   :  { %1506 = vmatprep.subr.bf16.mxu0 %v1505_v55 }
 0x2c6   :  { %1508 = vmatpush3.bf16.msra.mxu0 %v1505_v55  ;;  %v197_v55 = vsub.s32 0, %v1858_v50 }
 0x2c7   :  { %1511 = vmatprep.subr.msk.bf16.mxu0 %vm1726_vm1, %v1716_v8 }
 0x2c8   :  { %v585_v59 = vpop.permute.xlu1 %584 }
 0x2cc   :  { %v1595_v56 = vpop.eup %1594 }
 0x2cd   :  { %v1597_v57 = vpop.eup %1596  ;;  %1396 = vmatprep.mubr.msk.f32.mxu0 %vm280_vm2, %v1595_v56  ;;  %v481_v34 = vsel %vm280_vm2, %v1595_v56, 0.0 }
 0x2ce   :  { %1397 = vmatmul.mubr.msk.f32.vlgmr.msra.gmra.mrb[8].mxu0 %vm280_vm2, %v1597_v57  ;;  %v484_v35 = vsel %vm280_vm2, %v1597_v57, 0.0  ;;  %v1867_v57 = vld [vmem:[%s1989_s4] sm:$0xff] }
 0x2cf   :  { %1514 = vmatpush3.bf16.xpose.msk.msra.mxu0 %vm1726_vm1, %v1716_v8  ;;  %1403 = vmatprep.mubr.msk.f32.mxu0 %vm38_vm0, %v583_v58 }
 0x2d6   :  { %1404 = vmatmul.mubr.msk.f32.vlgmr.msra.gmra.mrb[10].mxu0 %vm38_vm0, %v585_v59 }
 0x32e   :  { %v1812_v60 = vpop.f32.mrb[6].mxu0 }
 0x32f   :  { %v1814_v61 = vpop.f32.mrb[7].mxu0 }
 0x3a1   :  { %v1816_v62 = vpop.f32.mrb[8].mxu0 }
 0x3a2   :  { %v1818_v63 = vpop.f32.mrb[9].mxu0 }
 0x3a9   :  { %v1405_v0 = vpop.f32.mrb[10].mxu0 }
 0x3aa   :  { %v662_v1 = vadd.f32 %v1405_v0, %v1773_v24  ;;  %v656_v2 = vpop.f32.mrb[11].mxu0  ;;  %v198_v0 = vrot.slane %v1867_v57, %v197_v55  ;;  %v1104_v55 = vld [vmem:[%s1988_s3 + $0x30] sm:$0xff] }
 0x3ab   :  { %v657_v3 = vadd.f32 %v656_v2, %v1778_v26 }
 0x3ac   :  { %v668_v4 = vsel %vm280_vm2, %v662_v1, -inf }
 0x3ad   :  { %669 = vmax.xlane.f32.xlu0 %v668_v4  ;;  %v665_v7 = vsel %vm280_vm2, %v657_v3, -inf }
 0x3ae   :  { %666 = vmax.xlane.f32.xlu1 %v665_v7 }
 0x3c3   :  { %1581 = vrot.lane.b32.xlu0 %v1768_v23, %s1655_s1 }
 0x3c7   :  { %776 = vrot.lane.b32.xlu0 %v1756_v17, %s1656_s17 }
 0x3cb   :  { %778 = vrot.lane.b32.xlu0 %v1754_v16, %s1656_s17 }
 0x43a   :  { %v670_v9 = vpop.xlane.xlu0 %669 }
 0x43b   :  { %v672_v10 = vsub.f32 %v662_v1, %v670_v9  ;;  %v667_v12 = vpop.xlane.xlu1 %666 }
 0x43c   :  { %v671_v13 = vsub.f32 %v657_v3, %v667_v12 }
 0x43d   :  { %v675_v14 = vmul.f32 1.442695, %v672_v10 }
 0x43e   :  { %v673_v15 = vmul.f32 1.442695, %v671_v13  ;;  %v1582_v18 = vpop.permute.xlu0 %1581 }
 0x43f   :  { %v1584_v19 = vunpack.i.h.bf16 %v1582_v18  ;;  %v1583_v20 = vunpack.i.l.bf16 %v1582_v18 }
 0x440   :  { %1598 = vpow2.f32 %v673_v15 }
 0x441   :  { %1600 = vpow2.f32 %v675_v14  ;;  %v1515_v21 = vpack.c.bf16 %v1584_v19, %v1583_v20 }
 0x442   :  { %v777_v22 = vpop.permute.xlu0 %776 }
 0x443   :  { %1516 = vmatprep.subr.bf16.mxu1 %v1515_v21 }
 0x444   :  { %1518 = vmatpush3.bf16.msra.mxu1 %v1515_v21 }
 0x445   :  { %1521 = vmatprep.subr.msk.bf16.mxu1 %vm1726_vm1, %v1716_v8 }
 0x446   :  { %v779_v25 = vpop.permute.xlu0 %778 }
 0x44a   :  { %v1599_v17 = vpop.eup %1598 }
 0x44b   :  { %v1601_v16 = vpop.eup %1600  ;;  %1410 = vmatprep.mubr.msk.f32.mxu1 %vm280_vm2, %v1599_v17 }
 0x44c   :  { %1411 = vmatmul.mubr.msk.f32.vlgmr.msra.gmra.mrb[2].mxu1 %vm280_vm2, %v1601_v16 }
 0x44d   :  { %1524 = vmatpush3.bf16.xpose.msk.msra.mxu1 %vm1726_vm1, %v1716_v8  ;;  %1417 = vmatprep.mubr.msk.f32.mxu1 %vm38_vm0, %v777_v22 }
 0x454   :  { %1418 = vmatmul.mubr.msk.f32.vlgmr.msra.gmra.mrb[4].mxu1 %vm38_vm0, %v779_v25 }
 0x51f   :  { %v1840_v27 = vpop.f32.mrb[2].mxu1 }
 0x520   :  { %v1842_v28 = vpop.f32.mrb[3].mxu1 }
 0x527   :  { %v1419_v29 = vpop.f32.mrb[4].mxu1 }
 0x528   :  { %v856_v30 = vadd.f32 %v1419_v29, %v1773_v24  ;;  %v850_v31 = vpop.f32.mrb[5].mxu1  ;;  %v677_v24 = vsel %vm280_vm2, %v1599_v17, 0.0 }
 0x529   :  { %v851_v32 = vadd.f32 %v850_v31, %v1778_v26  ;;  %v680_v26 = vsel %vm280_vm2, %v1601_v16, 0.0 }
 0x52a   :  { %v862_v33 = vsel %vm280_vm2, %v856_v30, -inf }
 0x52b   :  { %863 = vmax.xlane.f32.xlu1 %v862_v33  ;;  %v859_v8 = vsel %vm280_vm2, %v851_v32, -inf }
 0x52c   :  { %860 = vmax.xlane.f32.xlu0 %v859_v8 }
 0x530   :  { %297 = vadd.xlane.f32.xlu0 %v296_v11 }
 0x534   :  { %482 = vadd.xlane.f32.xlu0 %v481_v34 }
 0x538   :  { %485 = vadd.xlane.f32.xlu0 %v484_v35 }
 0x53c   :  { %1586 = vrot.lane.b32.xlu1 %v1768_v23, %s1656_s17  ;;  %678 = vadd.xlane.f32.xlu0 %v677_v24 }
 0x540   :  { %681 = vadd.xlane.f32.xlu0 %v680_v26 }
 0x560   :  { %294 = vadd.xlane.f32.xlu1 %v293_v36 }
 0x5b8   :  { %v864_v37 = vpop.xlane.xlu1 %863 }
 0x5b9   :  { %v866_v38 = vsub.f32 %v856_v30, %v864_v37  ;;  %v861_v39 = vpop.xlane.xlu0 %860 }
 0x5ba   :  { %v865_v40 = vsub.f32 %v851_v32, %v861_v39 }
 0x5bb   :  { %v869_v41 = vmul.f32 1.442695, %v866_v38 }
 0x5bc   :  { %v867_v42 = vmul.f32 1.442695, %v865_v40  ;;  %v1587_v43 = vpop.permute.xlu1 %1586  ;;  %v27_v40 = vld [vmem:[%s1987_s2 + $0x10] sm:$0xff] }
 0x5bd   :  { %v1589_v45 = vunpack.i.h.bf16 %v1587_v43  ;;  %v1588_v46 = vunpack.i.l.bf16 %v1587_v43  ;;  %v298_v47 = vpop.xlane.xlu0 %297  ;;  %v33_v43 = vld [vmem:[%s1987_s2 + $0x40] sm:$0xff] }
 0x5be   :  { %1602 = vpow2.f32 %v867_v42 }
 0x5bf   :  { %1604 = vpow2.f32 %v869_v41  ;;  %v1525_v23 = vpack.c.bf16 %v1589_v45, %v1588_v46  ;;  %v30_v41 = vld [vmem:[%s1987_s2 + $0x28] sm:$0xff]  ;;  %v36_v45 = vld [vmem:[%s1987_s2 + $0x58] sm:$0xff] }
 0x5c0   :  { %1606 = vrcp.f32 %v298_v47  ;;  %v1529_v42 = vpack.c.bf16 %v30_v41, %v27_v40  ;;  %v1533_v46 = vpack.c.bf16 %v36_v45, %v33_v43  ;;  %v1098_v47 = vld [vmem:[%s1988_s3] sm:$0xff] }
 0x5c1   :  { %1526 = vmatprep.subr.bf16.mxu0 %v1525_v23  ;;  %v483_v48 = vpop.xlane.xlu0 %482 }
 0x5c2   :  { %1528 = vmatpush3.bf16.msra.mxu0 %v1525_v23  ;;  %v1099_v23 = vld [vmem:[%s1988_s3 + $0x8] sm:$0xff] }
 0x5c3   :  { %1530 = vmatprep.subr.bf16.mxu0 %v1529_v42  ;;  %v1537_v49 = vpack.c.bf16 %v1099_v23, %v1098_v47 }
 0x5c5   :  { %v486_v44 = vpop.xlane.xlu0 %485  ;;  %1538 = vmatprep.subr.bf16.mxu1 %v1537_v49 }
 0x5c6   :  { %1608 = vrcp.f32 %v486_v44  ;;  %v1101_v44 = vld [vmem:[%s1988_s3 + $0x18] sm:$0xff]  ;;  %1540 = vmatpush3.bf16.msra.mxu1 %v1537_v49 }
 0x5c8   :  { %v1603_v51 = vpop.eup %1602 }
 0x5c9   :  { %v1605_v52 = vpop.eup %1604  ;;  %1424 = vmatprep.mubr.msk.f32.mxu0 %vm280_vm2, %v1603_v51  ;;  %v679_v53 = vpop.xlane.xlu0 %678  ;;  %v871_v54 = vsel %vm280_vm2, %v1603_v51, 0.0 }
 0x5ca   :  { %v1607_v56 = vpop.eup %1606  ;;  %1425 = vmatmul.mubr.msk.f32.vlgmr.msra.gmra.mrb[12].mxu0 %vm280_vm2, %v1605_v52  ;;  %872 = vadd.xlane.f32.xlu0 %v871_v54  ;;  %v874_v59 = vsel %vm280_vm2, %v1605_v52, 0.0  ;;  %v1102_v52 = vld [vmem:[%s1988_s3 + $0x20] sm:$0xff] }
 0x5cb   :  { %v383_v1 = vmul.f32 %v1607_v56, %v1812_v60  ;;  %1532 = vmatpush3.bf16.msra.mxu0 %v1529_v42  ;;  %v1105_v56 = vld [vmem:[%s1988_s3 + $0x38] sm:$0xff] }
 0x5cc   :  { %1534 = vmatprep.subr.bf16.mxu0 %v1533_v46 }
 0x5cd   :  { %v682_v58 = vpop.xlane.xlu0 %681  ;;  %v385_v3 = vadd.f32 %v383_v1, %v198_v0 }
 0x5ce   :  { %1610 = vrcp.f32 %v682_v58  ;;  %875 = vadd.xlane.f32.xlu0 %v874_v59  ;;  %v1549_v58 = vpack.c.bf16 %v1105_v56, %v1104_v55  ;;  %v1106_v59 = vld [vmem:[%s1988_s3 + $0x40] sm:$0xff] }
 0x5cf   :  { %1612 = vrcp.f32 %v483_v48  ;;  %1536 = vmatpush3.bf16.msra.mxu0 %v1533_v46  ;;  %v1100_v48 = vld [vmem:[%s1988_s3 + $0x10] sm:$0xff] }
 0x5d0   :  { %v1609_v2 = vpop.eup %1608  ;;  %v1541_v51 = vpack.c.bf16 %v1101_v44, %v1100_v48 }
 0x5d1   :  { %v579_v4 = vmul.f32 %v1609_v2, %v1816_v62  ;;  %v1108_v2 = vld [vmem:[%s1988_s3 + $0x50] sm:$0xff] }
 0x5d2   :  { %1542 = vmatprep.subr.bf16.mxu1 %v1541_v51 }
 0x5d3   :  { %v581_v7 = vadd.f32 %v579_v4, %v385_v3  ;;  %1544 = vmatpush3.bf16.msra.mxu1 %v1541_v51  ;;  %v1109_v3 = vld [vmem:[%s1988_s3 + $0x58] sm:$0xff] }
 0x5d4   :  { %v1557_v4 = vpack.c.bf16 %v1109_v3, %v1108_v2  ;;  %v1229_v2 = vsub.s32 6, %v1858_v50 }
 0x5d8   :  { %v1611_v9 = vpop.eup %1610 }
 0x5d9   :  { %v773_v10 = vmul.f32 %v1611_v9, %v1840_v27  ;;  %v1613_v14 = vpop.eup %1612  ;;  %v1111_v9 = vld [vmem:[%s1988_s3 + $0x68] sm:$0xff] }
 0x5da   :  { %v578_v20 = vmul.f32 %v1613_v14, %v1818_v63 }
 0x5db   :  { %v775_v12 = vadd.f32 %v773_v10, %v581_v7  ;;  %v1110_v7 = vld [vmem:[%s1988_s3 + $0x60] sm:$0xff] }
 0x5dc   :  { %v1561_v10 = vpack.c.bf16 %v1111_v9, %v1110_v7 }
 0x5ed   :  { %v295_v13 = vpop.xlane.xlu1 %294 }
 0x5ee   :  { %1614 = vrcp.f32 %v295_v13 }
 0x5ef   :  { %1616 = vrcp.f32 %v679_v53  ;;  %v1103_v53 = vld [vmem:[%s1988_s3 + $0x28] sm:$0xff] }
 0x5f0   :  { %v1545_v54 = vpack.c.bf16 %v1103_v53, %v1102_v52 }
 0x5f2   :  { %1546 = vmatprep.subr.bf16.mxu1 %v1545_v54 }
 0x5f3   :  { %1548 = vmatpush3.bf16.msra.mxu1 %v1545_v54 }
 0x5f4   :  { %1550 = vmatprep.subr.bf16.mxu1 %v1549_v58 }
 0x5f7   :  { %1552 = vmatpush3.bf16.msra.mxu1 %v1549_v58 }
 0x5f8   :  { %v1615_v15 = vpop.eup %1614 }
 0x5f9   :  { %v382_v18 = vmul.f32 %v1615_v15, %v1814_v61  ;;  %v1617_v60 = vpop.eup %1616 }
 0x5fa   :  { %v772_v62 = vmul.f32 %v1617_v60, %v1842_v28 }
 0x5fb   :  { %v384_v19 = vadd.f32 %v382_v18, %v198_v0  ;;  %v1107_v0 = vld [vmem:[%s1988_s3 + $0x48] sm:$0xff] }
 0x5fc   :  { %v1553_v1 = vpack.c.bf16 %v1107_v0, %v1106_v59 }
 0x5fd   :  { %v580_v21 = vadd.f32 %v578_v20, %v384_v19  ;;  %v1001_v19 = vsub.s32 1, %v1858_v50  ;;  %v1007_v20 = vsub.s32 2, %v1858_v50 }
 0x5fe   :  { %1554 = vmatprep.subr.bf16.mxu1 %v1553_v1 }
 0x5ff   :  { %v774_v17 = vadd.f32 %v772_v62, %v580_v21  ;;  %1556 = vmatpush3.bf16.msra.mxu1 %v1553_v1  ;;  %v1002_v21 = vrot.slane %v1867_v57, %v1001_v19  ;;  %v1223_v1 = vsub.s32 5, %v1858_v50 }
 0x600   :  { %1558 = vmatprep.subr.bf16.mxu1 %v1557_v4 }
 0x601   :  { %v1224_v3 = vrot.slane %v1867_v57, %v1223_v1 }
 0x603   :  { %1560 = vmatpush3.bf16.msra.mxu1 %v1557_v4 }
 0x604   :  { %1562 = vmatprep.subr.bf16.mxu1 %v1561_v10 }
 0x607   :  { %1564 = vmatpush3.bf16.msra.mxu1 %v1561_v10  ;;  %v1230_v10 = vrot.slane %v1867_v57, %v1229_v2 }
 0x657   :  { %v873_v16 = vpop.xlane.xlu0 %872 }
 0x65b   :  { %v876_v22 = vpop.xlane.xlu0 %875 }
 0x65c   :  { %1618 = vrcp.f32 %v876_v22 }
 0x65d   :  { %1620 = vrcp.f32 %v873_v16 }
 0x666   :  { %v1619_v25 = vpop.eup %1618 }
 0x667   :  { %v1621_v29 = vpop.eup %1620 }
 0x69d   :  { %v1426_v27 = vpop.f32.mrb[12].mxu0 }
 0x69e   :  { %v967_v30 = vmul.f32 %v1619_v25, %v1426_v27  ;;  %v957_v31 = vpop.f32.mrb[13].mxu0  ;;  %v1008_v25 = vrot.slane %v1867_v57, %v1007_v20 }
 0x69f   :  { %v966_v32 = vmul.f32 %v1621_v29, %v957_v31 }
 0x6a0   :  { %v969_v33 = vadd.f32 %v967_v30, %v775_v12 }
 0x6a1   :  { %v968_v61 = vadd.f32 %v966_v32, %v774_v17  ;;  %v1112_v32 = vld [vmem:[%s1988_s3 + $0x70] sm:$0xff] }
 0x6a2   :  { %v971_v8 = vadd.f32 %v969_v33, %v1710_v6  ;;  %v1113_v33 = vld [vmem:[%s1988_s3 + $0x78] sm:$0xff]  ;;  %s1657_s3 = smov [#allocation2]  }
 0x6a3   :  { %v970_v63 = vadd.f32 %v968_v61, %v1705_v5  ;;  %v1565_v61 = vpack.c.bf16 %v1113_v33, %v1112_v32  ;;  %s1240_s30 = sshll.u32 %s1657_s3, 4  ;;  %s1241_s30 = int_to_ptr.vmem [resolvable:$true] %s1240_s30 }
 0x6a4   :  { %v975_v11 = vsel %vm38_vm0, %v971_v8, 0.0  ;;  %s1630_s6 = scalar_lea.vmem %s1241_s30, 256  ;;  %p1635_p1 = scmp.lt.s32.totalorder %s1241_s30, %s1241_s30 }
 0x6a5   :  { %976 = vadd.xlane.f32.xlu0 %v975_v11  ;;  %v972_v28 = vsel %vm38_vm0, %v970_v63, 0.0  ;;  %1566 = vmatprep.subr.bf16.mxu1 %v1565_v61  ;;  %p1631_p0 = scmp.ne.s32.totalorder %s1241_s30, %s1630_s6  ;;  %p1636_p2 = scmp.lt.s32.totalorder %s1630_s6, %s1630_s6 }
 0x6a6   :  { %973 = vadd.xlane.f32.xlu1 %v972_v28  ;;  %1568 = vmatpush3.bf16.msra.mxu1 %v1565_v61 }
 0x6a7   :  { %p1637_p3 = por %p1636_p2, %p1635_p1 }
 0x6a9   :  { %p1638_p4 = pnand %p1637_p3, %p1631_p0 }
 0x732   :  { %v977_v34 = vpop.xlane.xlu0 %976 }
 0x733   :  { %v980_v35 = vmul.f32 0.03125, %v977_v34  ;;  %v974_v24 = vpop.xlane.xlu1 %973 }
 0x734   :  { %v979_v26 = vmul.f32 0.03125, %v974_v24 }
 0x735   :  { %v1881_v36 = vsub.f32 %v971_v8, %v980_v35  ;;  %v1013_v8 = vsub.s32 3, %v1858_v50 }
 0x736   :  { %v1883_v37 = vsub.f32 %v970_v63, %v979_v26 }
 0x737   :  { %v984_v38 = vmul.f32 %v1881_v36, %v1881_v36  ;;  %v1014_v63 = vrot.slane %v1867_v57, %v1013_v8 }
 0x738   :  { %v983_v5 = vmul.f32 %v1883_v37, %v1883_v37 }
 0x739   :  { %v988_v6 = vsel %vm38_vm0, %v984_v38, 0.0 }
 0x73a   :  { %989 = vadd.xlane.f32.xlu0 %v988_v6  ;;  %v985_v39 = vsel %vm38_vm0, %v983_v5, 0.0 }
 0x73b   :  { %986 = vadd.xlane.f32.xlu1 %v985_v39 }
 0x7c7   :  { %v990_v12 = vpop.xlane.xlu0 %989 }
 0x7c8   :  { %v992_v13 = vmul.f32 0.03125, %v990_v12  ;;  %v987_v14 = vpop.xlane.xlu1 %986 }
 0x7c9   :  { %v991_v15 = vmul.f32 0.03125, %v987_v14 }
 0x7ca   :  { %v994_v18 = vadd.f32 1e-05, %v992_v13 }
 0x7cb   :  { %v993_v60 = vadd.f32 1e-05, %v991_v15 }
 0x7cc   :  { %1622 = vrsqrt.f32 %v994_v18 }
 0x7cd   :  { %1624 = vrsqrt.f32 %v993_v60 }
 0x7d6   :  { %v1623_v62 = vpop.eup %1622 }
 0x7d7   :  { %v1625_v17 = vpop.eup %1624  ;;  %v998_v16 = vmul.f32 %v1623_v62, %v1881_v36  ;;  %v1116_v36 = vsub.s32 4, %v1858_v50 }
 0x7d8   :  { %v997_v22 = vmul.f32 %v1625_v17, %v1883_v37 }
 0x7d9   :  { %v1004_v27 = vmul.f32 %v1002_v21, %v998_v16  ;;  %v1117_v37 = vrot.slane %v1867_v57, %v1116_v36 }
 0x7da   :  { %v1003_v29 = vmul.f32 %v1002_v21, %v997_v22 }
 0x7db   :  { %v1010_v31 = vadd.f32 %v1008_v25, %v1004_v27 }
 0x7dc   :  { %v1009_v30 = vadd.f32 %v1008_v25, %v1003_v29 }
 0x7de   :  { %1435 = vmatprep.mubr.msk.f32.mxu0 %vm38_vm0, %v1009_v30 }
 0x7df   :  { %1436 = vmatmul.mubr.msk.f32.vlgmr.msra.gmra.mrb[14].mxu0 %vm38_vm0, %v1010_v31 }
 0x8b2   :  { %v1437_v11 = vpop.f32.mrb[14].mxu0 }
 0x8b3   :  { %v1093_v28 = vadd.f32 %v1437_v11, %v1014_v63  ;;  %v1087_v34 = vpop.f32.mrb[15].mxu0 }
 0x8b4   :  { %v1088_v35 = vadd.f32 %v1087_v34, %v1014_v63 }
 0x8b5   :  { %v1097_v26 = vmax.f32 %v1093_v28, 0.0 }
 0x8b6   :  { %v1096_v24 = vmax.f32 %v1088_v35, 0.0 }
 0x8b8   :  { %1470 = vmatprep.mubr.f32.mxu1 %v1096_v24 }
 0x8b9   :  { %1471 = vmatmul.mubr.f32.vlgmr.msra.gmra.mrb[6].mxu1 %v1097_v26 }
 0x98c   :  { %v1472_v38 = vpop.f32.mrb[6].mxu1 }
 0x98d   :  { %v1190_v5 = vadd.f32 %v1472_v38, %v1117_v37  ;;  %v1184_v6 = vpop.f32.mrb[7].mxu1 }
 0x98e   :  { %v1185_v39 = vadd.f32 %v1184_v6, %v1117_v37 }
 0x98f   :  { %v1194_v40 = vadd.f32 %v1190_v5, %v1010_v31 }
 0x990   :  { %v1193_v41 = vadd.f32 %v1185_v39, %v1009_v30 }
 0x991   :  { %v1198_v42 = vsel %vm38_vm0, %v1194_v40, 0.0 }
 0x992   :  { %1199 = vadd.xlane.f32.xlu0 %v1198_v42  ;;  %v1195_v43 = vsel %vm38_vm0, %v1193_v41, 0.0 }
 0x993   :  { %1196 = vadd.xlane.f32.xlu1 %v1195_v43 }
 0xa1f   :  { %v1200_v45 = vpop.xlane.xlu0 %1199 }
 0xa20   :  { %v1202_v46 = vmul.f32 0.03125, %v1200_v45  ;;  %v1197_v47 = vpop.xlane.xlu1 %1196 }
 0xa21   :  { %v1201_v23 = vmul.f32 0.03125, %v1197_v47 }
 0xa22   :  { %v1204_v48 = vsub.f32 %v1194_v40, %v1202_v46 }
 0xa23   :  { %v1203_v49 = vsub.f32 %v1193_v41, %v1201_v23 }
 0xa24   :  { %v1206_v44 = vmul.f32 %v1204_v48, %v1204_v48 }
 0xa25   :  { %v1205_v51 = vmul.f32 %v1203_v49, %v1203_v49 }
 0xa26   :  { %v1210_v52 = vsel %vm38_vm0, %v1206_v44, 0.0 }
 0xa27   :  { %1211 = vadd.xlane.f32.xlu0 %v1210_v52  ;;  %v1207_v53 = vsel %vm38_vm0, %v1205_v51, 0.0 }
 0xa28   :  { %1208 = vadd.xlane.f32.xlu1 %v1207_v53 }
 0xab4   :  { %v1212_v54 = vpop.xlane.xlu0 %1211 }
 0xab5   :  { %v1214_v55 = vmul.f32 0.03125, %v1212_v54  ;;  %v1209_v56 = vpop.xlane.xlu1 %1208 }
 0xab6   :  { %v1213_v58 = vmul.f32 0.03125, %v1209_v56 }
 0xab7   :  { %v1216_v59 = vadd.f32 1e-05, %v1214_v55 }
 0xab8   :  { %v1215_v0 = vadd.f32 1e-05, %v1213_v58 }
 0xab9   :  { %1626 = vrsqrt.f32 %v1216_v59 }
 0xaba   :  { %1628 = vrsqrt.f32 %v1215_v0 }
 0xac3   :  { %v1627_v4 = vpop.eup %1626 }
 0xac4   :  { %v1629_v7 = vpop.eup %1628  ;;  %v1220_v9 = vmul.f32 %v1627_v4, %v1204_v48 }
 0xac5   :  { %v1219_v12 = vmul.f32 %v1629_v7, %v1203_v49 }
 0xac6   :  { %v1226_v13 = vmul.f32 %v1224_v3, %v1220_v9 }
 0xac7   :  { %v1225_v14 = vmul.f32 %v1224_v3, %v1219_v12 }
 0xac8   :  { %v1232_v15 = vadd.f32 %v1230_v10, %v1226_v13 }
 0xac9   :  { %v1231_v18 = vadd.f32 %v1230_v10, %v1225_v14 }
 0xaca   :  { %1234 = vst.msk [vmem:[#allocation2 + $0x8] sm:$0xff] %vm38_vm0, %v1232_v15 }
 0xacb   :  { %1233 = vst.msk [vmem:[#allocation2] sm:$0xff] %vm38_vm0, %v1231_v18 }
 0xacc   :  { %1641 = shalt.err (!%p1638_p4)
}
 0xacd   :  { %s1642_s2 = scalar_lea.hbm %s1990_s5, 256 }
 0xace   :  { %p1643_p5 = scmp.ne.s32.totalorder %s1990_s5, %s1642_s2  ;;  %p1646_p6 = scmp.lt.u32.totalorder %s1642_s2, %s1990_s5 }
 0xad0   :  { %p1648_p7 = pnand %p1646_p6, %p1643_p5 }
 0xad2   :  { %1651 = shalt.err (!%p1648_p7)
}
 0xad3   :  { %s1658_s12 = smov 128   ;;  %s1659_s13 = smov 8  }
 0xad4   :  { %1246 = dma.vmem_to_hbm [thread:$0]  %s1241_s30, 256, %s1990_s5, [#allocation3], %s1658_s12, %s1658_s12, %s1659_s13  }
 0xad5   :  { %1652 = dma.done.wait [#allocation3], 256  }
 0xad6   :  { %1653 = vsyncadd [#allocation3], 4294967040 }
 0xad7   :  { %1250 = vsyncpa [#allocation3], 1 }

</bundles_post_ra>
